<compile_context>
chip_gen: v5e
topology: v5e:2x2
jax: 0.10.0
libtpu: 0.0.40
codegen_flags: <defaults>
</compile_context>

<pallas_src>
import functools
import math

import jax
import jax.numpy as jnp
from jax.experimental import pallas as pl
from jax.experimental.pallas import tpu as pltpu


def _round_up(v, m):
    return (v + m - 1) // m * m


def _pick_tq(S, cap=256):
    """Largest query tile <= cap that divides S and is a multiple of 8, else S."""
    if S <= cap:
        return S
    start = (min(cap, S) // 8) * 8
    for t in range(start, 7, -8):
        if S % t == 0:
            return t
    return S  # no aligned divisor: run the whole sequence as one tile


# -----------------------------------------------------------------------------
# Kernel: one (batch, query-tile) slab per grid step.  K/V are projected once
# per batch element (qi == 0) into bf16 VMEM caches and reused across qi.
# -----------------------------------------------------------------------------
def single_head_attention_kernel(
    x_ref,        # (S, Dp)      bf16, full sequence of this batch element
    w_ref,        # (4, Dp, Dp)  bf16, packed [Wq, Wk, Wv, Wo]
    b_ref,        # (4, 1, Dp)   f32,  packed [bq, bk, bv, bo]
    o_ref,        # (tq, Dp)     f32
    k_cache,      # (S, Dp)      bf16 VMEM scratch
    v_cache,      # (S, Dp)      bf16 VMEM scratch
    *, tq, d_model,
):
    qi = pl.program_id(1)

    # Project K and V once per batch element; reuse for every query tile.
    @pl.when(qi == 0)
    def _():
        x_all = x_ref[...]                                          # (S, Dp) bf16
        k = jnp.dot(x_all, w_ref[1], preferred_element_type=jnp.float32) + b_ref[1]
        v = jnp.dot(x_all, w_ref[2], preferred_element_type=jnp.float32) + b_ref[2]
        k_cache[...] = k.astype(jnp.bfloat16)
        v_cache[...] = v.astype(jnp.bfloat16)

    q_start = pl.multiple_of(qi * tq, tq)
    x_q = x_ref[pl.ds(q_start, tq), :]                              # (tq, Dp) bf16

    # Q projection; fold 1/sqrt(d_k) (d_k = d_model) into Q while still f32.
    scale = 1.0 / math.sqrt(d_model)
    q = jnp.dot(x_q, w_ref[0], preferred_element_type=jnp.float32) + b_ref[0]
    q = (q * scale).astype(jnp.bfloat16)

    # Scores + softmax statistics in f32.
    s = jnp.einsum("qd,kd->qk", q, k_cache[...],
                   preferred_element_type=jnp.float32)              # (tq, S)
    s = s - jnp.max(s, axis=-1, keepdims=True)
    p = jnp.exp(s)
    row_sum = jnp.sum(p, axis=-1, keepdims=True)                    # (tq, 1)

    # Un-normalized PV matmul, then normalize the (tq, Dp) result (cheaper than
    # scaling the (tq, S) probabilities, and off the MXU critical path).
    attn = jnp.dot(p.astype(jnp.bfloat16), v_cache[...],
                   preferred_element_type=jnp.float32)              # (tq, Dp)
    attn = attn * pl.reciprocal(row_sum, approx=True)

    out = jnp.dot(attn.astype(jnp.bfloat16), w_ref[3],
                  preferred_element_type=jnp.float32) + b_ref[3]
    o_ref[...] = out.astype(o_ref.dtype)


# -----------------------------------------------------------------------------
# Host-side wrapper
# -----------------------------------------------------------------------------
def _vmem_limit_bytes(S, Dp, tq):
    resident = (
        2 * S * Dp * 2          # x block (bf16, double-buffered)
        + 2 * 4 * Dp * Dp * 2   # packed weights (bf16; upper bound: 2 buffers)
        + 2 * 4 * Dp * 4        # packed biases  (f32;  upper bound: 2 buffers)
        + 2 * tq * Dp * 4       # output block (f32, double-buffered)
        + 2 * S * Dp * 2        # K/V bf16 scratch caches
    )
    intermediates = (
        2 * S * Dp * 4          # K, V f32 before the bf16 cast (qi == 0 only)
        + tq * Dp * 4           # Q f32
        + 2 * tq * S * 4        # scores / exp(scores) f32
        + 2 * tq * Dp * 4       # attn / out f32
    )
    need = int(1.25 * (resident + intermediates)) + (2 << 20)
    try:
        cap = pltpu.get_tpu_info().vmem_capacity_bytes
    except Exception:
        cap = 64 << 20          # conservative fallback (v7x per-core VMEM)
    return max(4 << 20, min(need, int(0.8 * cap)))


def _build_call(B, S, Dp, tq, d_model, single_buffer_params):
    const_kw = dict(pipeline_mode=pl.Buffered(1)) if single_buffer_params else {}
    in_specs = [
        # Full sequence of one batch element; qi-invariant -> resident across
        # the query tiles of that batch element.
        pl.BlockSpec((pl.Squeezed(), S, Dp), lambda b, qi: (b, 0, 0)),
        # Packed weights / biases: constant index map -> fetched exactly once.
        pl.BlockSpec((4, Dp, Dp), lambda b, qi: (0, 0, 0), **const_kw),
        pl.BlockSpec((4, 1, Dp), lambda b, qi: (0, 0, 0), **const_kw),
    ]
    out_spec = pl.BlockSpec((pl.Squeezed(), tq, Dp), lambda b, qi: (b, qi, 0))
    kernel = functools.partial(single_head_attention_kernel, tq=tq, d_model=d_model)
    return pl.pallas_call(
        kernel,
        out_shape=jax.ShapeDtypeStruct((B, S, Dp), jnp.float32),
        grid_spec=pltpu.PrefetchScalarGridSpec(
            num_scalar_prefetch=0,
            grid=(B, S // tq),
            in_specs=in_specs,
            out_specs=out_spec,
            scratch_shapes=[
                pltpu.VMEM((S, Dp), jnp.bfloat16),   # K cache
                pltpu.VMEM((S, Dp), jnp.bfloat16),   # V cache
            ],
        ),
        compiler_params=pltpu.CompilerParams(
            # Batch axis parallel (megacore / 2 TCs on v7x); qi "arbitrary"
            # because query tiles reuse the K/V caches written at qi == 0.
            dimension_semantics=("parallel", "arbitrary"),
            vmem_limit_bytes=_vmem_limit_bytes(S, Dp, tq),
        ),
    )


def single_head_attention(x, params):
    B, S, D = x.shape
    Dp = _round_up(max(D, 128), 128)   # lane-dense model dim
    pad = Dp - D
    tq = _pick_tq(S)

    # Zero padding on D is mathematically inert through all four matmuls and
    # the softmax (padding is on the feature axis, not the sequence axis).
    x_p = jnp.pad(x, ((0, 0), (0, 0), (0, pad))).astype(jnp.bfloat16)
    w_packed = jnp.stack(
        [jnp.pad(params[n], ((0, pad), (0, pad))) for n in ("wq", "wk", "wv", "wo")]
    ).astype(jnp.bfloat16)                                     # (4, Dp, Dp)
    b_packed = jnp.stack(
        [jnp.pad(params[n], ((0, 0), (0, pad))) for n in ("bq", "bk", "bv", "bo")]
    ).astype(jnp.float32)                                      # (4, 1, Dp)

    try:
        out = _build_call(B, S, Dp, tq, D, True)(x_p, w_packed, b_packed)
    except Exception:
        # Fallback if this JAX build rejects pipeline_mode=pl.Buffered(1).
        out = _build_call(B, S, Dp, tq, D, False)(x_p, w_packed, b_packed)

    return out[..., :D]


# -----------------------------------------------------------------------------
# Deterministic parameter init (shapes follow SingleHeadAttention.__init__;
# weights stored pre-transposed as (in_features, out_features))
# -----------------------------------------------------------------------------
def init_params(key, d_model):
    ks = jax.random.split(key, 8)

    def lin(kw, kb):
        w = jax.random.normal(kw, (d_model, d_model), jnp.float32) * 0.02
        b = jax.random.normal(kb, (1, d_model), jnp.float32) * 0.01
        return w, b

    wq, bq = lin(ks[0], ks[1])
    wk, bk = lin(ks[2], ks[3])
    wv, bv = lin(ks[4], ks[5])
    wo, bo = lin(ks[6], ks[7])
    return dict(wq=wq, bq=bq, wk=wk, bk=bk, wv=wv, bv=bv, wo=wo, bo=bo)


# -----------------------------------------------------------------------------
# Pure-JAX f32 reference (same math as the PyTorch module)
# -----------------------------------------------------------------------------
def single_head_attention_ref(x, params):
    D = x.shape[-1]
    q = x @ params["wq"] + params["bq"]
    k = x @ params["wk"] + params["bk"]
    v = x @ params["wv"] + params["bv"]
    s = jnp.einsum("bqd,bkd->bqk", q, k) / math.sqrt(D)
    p = jax.nn.softmax(s, axis=-1)
    o = jnp.einsum("bqk,bkd->bqd", p, v)
    return o @ params["wo"] + params["bo"]


# -----------------------------------------------------------------------------
if __name__ == "__main__":
    B, S, D = 2, 8, 32

    key = jax.random.PRNGKey(0)
    kx, kp = jax.random.split(key)
    x = jax.random.normal(kx, (B, S, D), jnp.float32)
    params = init_params(kp, D)

    out = single_head_attention(x, params)
    out = jax.block_until_ready(out)

    ref = single_head_attention_ref(x, params)
    assert out.shape == (B, S, D)
    max_err = float(jnp.max(jnp.abs(out - ref)))
    # bf16 MXU operands + approx reciprocal -> loosened tolerance vs f32 ref.
    assert jnp.allclose(out, ref, rtol=2e-2, atol=2e-2), max_err
    print("KERNEL_OK")
</pallas_src>

<mosaic_0001>
module attributes {stable_mosaic.version = 11 : i64} {
  func.func @single_head_attention_kernel(%arg0: i32, %arg1: i32, %arg2: memref<1x8x128xbf16, #tpu.memory_space<vmem>>, %arg3: memref<4x128x128xbf16, #tpu.memory_space<vmem>>, %arg4: memref<4x1x128xf32, #tpu.memory_space<vmem>>, %arg5: memref<1x8x128xf32, #tpu.memory_space<vmem>>, %arg6: memref<8x128xbf16, #tpu.memory_space<vmem>>, %arg7: memref<8x128xbf16, #tpu.memory_space<vmem>>) attributes {dimension_semantics = [#tpu.dimension_semantics<parallel>, #tpu.dimension_semantics<arbitrary>], iteration_bounds = array<i64: 2, 1>, scalar_prefetch = 0 : i64, scratch_operands = 2 : i64, tpu.core_type = #tpu.core_type<tc>, window_params = [{transform_indices = @transform_0, window_bounds = array<i64: 1, 8, 128>}, {pipeline_mode = #tpu.pipeline_mode<synchronous>, transform_indices = @transform_1, window_bounds = array<i64: 4, 128, 128>}, {pipeline_mode = #tpu.pipeline_mode<synchronous>, transform_indices = @transform_2, window_bounds = array<i64: 4, 1, 128>}, {transform_indices = @transform_3, window_bounds = array<i64: 1, 8, 128>}]} {
    %c0_i32 = arith.constant 0 : i32
    %0 = arith.cmpi eq, %arg1, %c0_i32 : i32
    %1 = arith.extui %0 : i1 to i32
    %c0_i32_0 = arith.constant 0 : i32
    %2 = arith.cmpi ne, %1, %c0_i32_0 : i32
    scf.if %2 {
      %c0_26 = arith.constant 0 : index
      %c0_27 = arith.constant 0 : index
      %c0_28 = arith.constant 0 : index
      %44 = vector.load %arg2[%c0_26, %c0_27, %c0_28] : memref<1x8x128xbf16, #tpu.memory_space<vmem>>, vector<1x8x128xbf16>
      %45 = vector.shape_cast %44 : vector<1x8x128xbf16> to vector<8x128xbf16>
      %c1 = arith.constant 1 : index
      %c0_29 = arith.constant 0 : index
      %c0_30 = arith.constant 0 : index
      %46 = vector.load %arg3[%c1, %c0_29, %c0_30] : memref<4x128x128xbf16, #tpu.memory_space<vmem>>, vector<1x128x128xbf16>
      %47 = vector.shape_cast %46 : vector<1x128x128xbf16> to vector<128x128xbf16>
      %cst_31 = arith.constant dense<0.000000e+00> : vector<8x128xf32>
      %48 = tpu.matmul %45, %47, %cst_31 {dimension_numbers = #tpu.dot_dimension_numbers<[1], [0], [0], [1], [0, 0, 1, 1], [], []>} : vector<8x128xbf16>, vector<128x128xbf16>, vector<8x128xf32> -> vector<8x128xf32>
      %c1_32 = arith.constant 1 : index
      %c0_33 = arith.constant 0 : index
      %c0_34 = arith.constant 0 : index
      %49 = vector.load %arg4[%c1_32, %c0_33, %c0_34] : memref<4x1x128xf32, #tpu.memory_space<vmem>>, vector<1x1x128xf32>
      %50 = vector.shape_cast %49 : vector<1x1x128xf32> to vector<1x128xf32>
      %51 = vector.broadcast %50 : vector<1x128xf32> to vector<8x128xf32>
      %52 = arith.addf %48, %51 : vector<8x128xf32>
      %c2 = arith.constant 2 : index
      %c0_35 = arith.constant 0 : index
      %c0_36 = arith.constant 0 : index
      %53 = vector.load %arg3[%c2, %c0_35, %c0_36] : memref<4x128x128xbf16, #tpu.memory_space<vmem>>, vector<1x128x128xbf16>
      %54 = vector.shape_cast %53 : vector<1x128x128xbf16> to vector<128x128xbf16>
      %cst_37 = arith.constant dense<0.000000e+00> : vector<8x128xf32>
      %55 = tpu.matmul %45, %54, %cst_37 {dimension_numbers = #tpu.dot_dimension_numbers<[1], [0], [0], [1], [0, 0, 1, 1], [], []>} : vector<8x128xbf16>, vector<128x128xbf16>, vector<8x128xf32> -> vector<8x128xf32>
      %c2_38 = arith.constant 2 : index
      %c0_39 = arith.constant 0 : index
      %c0_40 = arith.constant 0 : index
      %56 = vector.load %arg4[%c2_38, %c0_39, %c0_40] : memref<4x1x128xf32, #tpu.memory_space<vmem>>, vector<1x1x128xf32>
      %57 = vector.shape_cast %56 : vector<1x1x128xf32> to vector<1x128xf32>
      %58 = vector.broadcast %57 : vector<1x128xf32> to vector<8x128xf32>
      %59 = arith.addf %55, %58 : vector<8x128xf32>
      %60 = arith.truncf %52 : vector<8x128xf32> to vector<8x128xbf16>
      %c0_41 = arith.constant 0 : index
      %c0_42 = arith.constant 0 : index
      %61 = vector.load %arg6[%c0_41, %c0_42] : memref<8x128xbf16, #tpu.memory_space<vmem>>, vector<8x128xbf16>
      tpu.vector_store %arg6[%c0_41, %c0_42], %60 {strides = array<i32>} : memref<8x128xbf16, #tpu.memory_space<vmem>>, vector<8x128xbf16>,
      %62 = arith.truncf %59 : vector<8x128xf32> to vector<8x128xbf16>
      %c0_43 = arith.constant 0 : index
      %c0_44 = arith.constant 0 : index
      %63 = vector.load %arg7[%c0_43, %c0_44] : memref<8x128xbf16, #tpu.memory_space<vmem>>, vector<8x128xbf16>
      tpu.vector_store %arg7[%c0_43, %c0_44], %62 {strides = array<i32>} : memref<8x128xbf16, #tpu.memory_space<vmem>>, vector<8x128xbf16>,
    } else {
    }
    %c8_i32 = arith.constant 8 : i32
    %3 = arith.muli %arg1, %c8_i32 : i32
    %4 = tpu.assume_multiple %3, 8 : i32
    %c0 = arith.constant 0 : index
    %5 = arith.index_cast %4 : i32 to index
    %c0_1 = arith.constant 0 : index
    %6 = vector.load %arg2[%c0, %5, %c0_1] : memref<1x8x128xbf16, #tpu.memory_space<vmem>>, vector<1x8x128xbf16>
    %7 = vector.shape_cast %6 : vector<1x8x128xbf16> to vector<8x128xbf16>
    %c0_2 = arith.constant 0 : index
    %c0_3 = arith.constant 0 : index
    %c0_4 = arith.constant 0 : index
    %8 = vector.load %arg3[%c0_2, %c0_3, %c0_4] : memref<4x128x128xbf16, #tpu.memory_space<vmem>>, vector<1x128x128xbf16>
    %9 = vector.shape_cast %8 : vector<1x128x128xbf16> to vector<128x128xbf16>
    %cst = arith.constant dense<0.000000e+00> : vector<8x128xf32>
    %10 = tpu.matmul %7, %9, %cst {dimension_numbers = #tpu.dot_dimension_numbers<[1], [0], [0], [1], [0, 0, 1, 1], [], []>} : vector<8x128xbf16>, vector<128x128xbf16>, vector<8x128xf32> -> vector<8x128xf32>
    %c0_5 = arith.constant 0 : index
    %c0_6 = arith.constant 0 : index
    %c0_7 = arith.constant 0 : index
    %11 = vector.load %arg4[%c0_5, %c0_6, %c0_7] : memref<4x1x128xf32, #tpu.memory_space<vmem>>, vector<1x1x128xf32>
    %12 = vector.shape_cast %11 : vector<1x1x128xf32> to vector<1x128xf32>
    %13 = vector.broadcast %12 : vector<1x128xf32> to vector<8x128xf32>
    %14 = arith.addf %10, %13 : vector<8x128xf32>
    %cst_8 = arith.constant 0.176776692 : f32
    %15 = vector.broadcast %cst_8 : f32 to vector<8x128xf32>
    %16 = arith.mulf %14, %15 : vector<8x128xf32>
    %17 = arith.truncf %16 : vector<8x128xf32> to vector<8x128xbf16>
    %c0_9 = arith.constant 0 : index
    %c0_10 = arith.constant 0 : index
    %18 = vector.load %arg6[%c0_9, %c0_10] : memref<8x128xbf16, #tpu.memory_space<vmem>>, vector<8x128xbf16>
    "tpu.trace_start"() <{level = 10 : i32, message = "qd,kd->qk"}> : () -> ()
    %cst_11 = arith.constant dense<0.000000e+00> : vector<8x8xf32>
    %19 = tpu.matmul %17, %18, %cst_11 {dimension_numbers = #tpu.dot_dimension_numbers<[1], [1], [0], [0], [0, 0, 1, 0], [], []>} : vector<8x128xbf16>, vector<8x128xbf16>, vector<8x8xf32> -> vector<8x8xf32>
    "tpu.trace_stop"() : () -> ()
    %cst_12 = arith.constant dense<0xFF800000> : vector<8xf32>
    %20 = vector.multi_reduction <maximumf>, %19, %cst_12 [1] : vector<8x8xf32> to vector<8xf32>
    %21 = vector.shape_cast %20 : vector<8xf32> to vector<8x1xf32>
    %22 = vector.broadcast %21 : vector<8x1xf32> to vector<8x8xf32>
    %23 = arith.subf %19, %22 : vector<8x8xf32>
    %24 = math.exp %23 : vector<8x8xf32>
    %cst_13 = arith.constant dense<0.000000e+00> : vector<8xf32>
    %25 = vector.multi_reduction <add>, %24, %cst_13 [1] : vector<8x8xf32> to vector<8xf32>
    %26 = vector.shape_cast %25 : vector<8xf32> to vector<8x1xf32>
    %27 = arith.truncf %24 : vector<8x8xf32> to vector<8x8xbf16>
    %c0_14 = arith.constant 0 : index
    %c0_15 = arith.constant 0 : index
    %28 = vector.load %arg7[%c0_14, %c0_15] : memref<8x128xbf16, #tpu.memory_space<vmem>>, vector<8x128xbf16>
    %cst_16 = arith.constant dense<0.000000e+00> : vector<8x128xf32>
    %29 = tpu.matmul %27, %28, %cst_16 {dimension_numbers = #tpu.dot_dimension_numbers<[1], [0], [0], [1], [0, 0, 1, 1], [], []>} : vector<8x8xbf16>, vector<8x128xbf16>, vector<8x128xf32> -> vector<8x128xf32>
    %30 = tpu.reciprocal %26 {approx = true} : vector<8x1xf32> -> vector<8x1xf32>
    %31 = vector.broadcast %30 : vector<8x1xf32> to vector<8x128xf32>
    %32 = arith.mulf %29, %31 : vector<8x128xf32>
    %33 = arith.truncf %32 : vector<8x128xf32> to vector<8x128xbf16>
    %c3 = arith.constant 3 : index
    %c0_17 = arith.constant 0 : index
    %c0_18 = arith.constant 0 : index
    %34 = vector.load %arg3[%c3, %c0_17, %c0_18] : memref<4x128x128xbf16, #tpu.memory_space<vmem>>, vector<1x128x128xbf16>
    %35 = vector.shape_cast %34 : vector<1x128x128xbf16> to vector<128x128xbf16>
    %cst_19 = arith.constant dense<0.000000e+00> : vector<8x128xf32>
    %36 = tpu.matmul %33, %35, %cst_19 {dimension_numbers = #tpu.dot_dimension_numbers<[1], [0], [0], [1], [0, 0, 1, 1], [], []>} : vector<8x128xbf16>, vector<128x128xbf16>, vector<8x128xf32> -> vector<8x128xf32>
    %c3_20 = arith.constant 3 : index
    %c0_21 = arith.constant 0 : index
    %c0_22 = arith.constant 0 : index
    %37 = vector.load %arg4[%c3_20, %c0_21, %c0_22] : memref<4x1x128xf32, #tpu.memory_space<vmem>>, vector<1x1x128xf32>
    %38 = vector.shape_cast %37 : vector<1x1x128xf32> to vector<1x128xf32>
    %39 = vector.broadcast %38 : vector<1x128xf32> to vector<8x128xf32>
    %40 = arith.addf %36, %39 : vector<8x128xf32>
    %c0_23 = arith.constant 0 : index
    %c0_24 = arith.constant 0 : index
    %c0_25 = arith.constant 0 : index
    %41 = vector.load %arg5[%c0_23, %c0_24, %c0_25] : memref<1x8x128xf32, #tpu.memory_space<vmem>>, vector<1x8x128xf32>
    %42 = vector.shape_cast %41 : vector<1x8x128xf32> to vector<8x128xf32>
    %43 = vector.shape_cast %40 : vector<8x128xf32> to vector<1x8x128xf32>
    tpu.vector_store %arg5[%c0_23, %c0_24, %c0_25], %43 {strides = array<i32>} : memref<1x8x128xf32, #tpu.memory_space<vmem>>, vector<1x8x128xf32>,
    return
  }
  func.func @transform_0(%arg0: i32, %arg1: i32) -> (i32, i32, i32) {
    %c0_i32 = arith.constant 0 : i32
    %c0_i32_0 = arith.constant 0 : i32
    %c0_i32_1 = arith.constant 0 : i32
    return %arg0, %c0_i32, %c0_i32_0 : i32, i32, i32
  }
  func.func @transform_1(%arg0: i32, %arg1: i32) -> (i32, i32, i32) {
    %c0_i32 = arith.constant 0 : i32
    %c0_i32_0 = arith.constant 0 : i32
    %c0_i32_1 = arith.constant 0 : i32
    %c0_i32_2 = arith.constant 0 : i32
    return %c0_i32, %c0_i32_0, %c0_i32_1 : i32, i32, i32
  }
  func.func @transform_2(%arg0: i32, %arg1: i32) -> (i32, i32, i32) {
    %c0_i32 = arith.constant 0 : i32
    %c0_i32_0 = arith.constant 0 : i32
    %c0_i32_1 = arith.constant 0 : i32
    %c0_i32_2 = arith.constant 0 : i32
    return %c0_i32, %c0_i32_0, %c0_i32_1 : i32, i32, i32
  }
  func.func @transform_3(%arg0: i32, %arg1: i32) -> (i32, i32, i32) {
    %c0_i32 = arith.constant 0 : i32
    %c0_i32_0 = arith.constant 0 : i32
    return %arg0, %arg1, %c0_i32 : i32, i32, i32
  }
}

module attributes {stable_mosaic.version = 11 : i64} {
  func.func @single_head_attention_kernel(%arg0: i32, %arg1: i32, %arg2: memref<1x8x128xbf16, #tpu.memory_space<vmem>>, %arg3: memref<4x128x128xbf16, #tpu.memory_space<vmem>>, %arg4: memref<4x1x128xf32, #tpu.memory_space<vmem>>, %arg5: memref<1x8x128xf32, #tpu.memory_space<vmem>>, %arg6: memref<8x128xbf16, #tpu.memory_space<vmem>>, %arg7: memref<8x128xbf16, #tpu.memory_space<vmem>>) attributes {dimension_semantics = [#tpu.dimension_semantics<parallel>, #tpu.dimension_semantics<arbitrary>], iteration_bounds = array<i64: 2, 1>, scalar_prefetch = 0 : i64, scratch_operands = 2 : i64, tpu.core_type = #tpu.core_type<tc>, window_params = [{transform_indices = @transform_0, window_bounds = array<i64: 1, 8, 128>}, {pipeline_mode = #tpu.pipeline_mode<synchronous>, transform_indices = @transform_1, window_bounds = array<i64: 4, 128, 128>}, {pipeline_mode = #tpu.pipeline_mode<synchronous>, transform_indices = @transform_2, window_bounds = array<i64: 4, 1, 128>}, {transform_indices = @transform_3, window_bounds = array<i64: 1, 8, 128>}]} {
    %c0_i32 = arith.constant 0 : i32
    %0 = arith.cmpi eq, %arg1, %c0_i32 : i32
    %1 = arith.extui %0 : i1 to i32
    %c0_i32_0 = arith.constant 0 : i32
    %2 = arith.cmpi ne, %1, %c0_i32_0 : i32
    scf.if %2 {
      %c0_26 = arith.constant 0 : index
      %c0_27 = arith.constant 0 : index
      %c0_28 = arith.constant 0 : index
      %44 = vector.load %arg2[%c0_26, %c0_27, %c0_28] : memref<1x8x128xbf16, #tpu.memory_space<vmem>>, vector<1x8x128xbf16>
      %45 = vector.shape_cast %44 : vector<1x8x128xbf16> to vector<8x128xbf16>
      %c1 = arith.constant 1 : index
      %c0_29 = arith.constant 0 : index
      %c0_30 = arith.constant 0 : index
      %46 = vector.load %arg3[%c1, %c0_29, %c0_30] : memref<4x128x128xbf16, #tpu.memory_space<vmem>>, vector<1x128x128xbf16>
      %47 = vector.shape_cast %46 : vector<1x128x128xbf16> to vector<128x128xbf16>
      %cst_31 = arith.constant dense<0.000000e+00> : vector<8x128xf32>
      %48 = tpu.matmul %45, %47, %cst_31 {dimension_numbers = #tpu.dot_dimension_numbers<[1], [0], [0], [1], [0, 0, 1, 1], [], []>} : vector<8x128xbf16>, vector<128x128xbf16>, vector<8x128xf32> -> vector<8x128xf32>
      %c1_32 = arith.constant 1 : index
      %c0_33 = arith.constant 0 : index
      %c0_34 = arith.constant 0 : index
      %49 = vector.load %arg4[%c1_32, %c0_33, %c0_34] : memref<4x1x128xf32, #tpu.memory_space<vmem>>, vector<1x1x128xf32>
      %50 = vector.shape_cast %49 : vector<1x1x128xf32> to vector<1x128xf32>
      %51 = vector.broadcast %50 : vector<1x128xf32> to vector<8x128xf32>
      %52 = arith.addf %48, %51 : vector<8x128xf32>
      %c2 = arith.constant 2 : index
      %c0_35 = arith.constant 0 : index
      %c0_36 = arith.constant 0 : index
      %53 = vector.load %arg3[%c2, %c0_35, %c0_36] : memref<4x128x128xbf16, #tpu.memory_space<vmem>>, vector<1x128x128xbf16>
      %54 = vector.shape_cast %53 : vector<1x128x128xbf16> to vector<128x128xbf16>
      %cst_37 = arith.constant dense<0.000000e+00> : vector<8x128xf32>
      %55 = tpu.matmul %45, %54, %cst_37 {dimension_numbers = #tpu.dot_dimension_numbers<[1], [0], [0], [1], [0, 0, 1, 1], [], []>} : vector<8x128xbf16>, vector<128x128xbf16>, vector<8x128xf32> -> vector<8x128xf32>
      %c2_38 = arith.constant 2 : index
      %c0_39 = arith.constant 0 : index
      %c0_40 = arith.constant 0 : index
      %56 = vector.load %arg4[%c2_38, %c0_39, %c0_40] : memref<4x1x128xf32, #tpu.memory_space<vmem>>, vector<1x1x128xf32>
      %57 = vector.shape_cast %56 : vector<1x1x128xf32> to vector<1x128xf32>
      %58 = vector.broadcast %57 : vector<1x128xf32> to vector<8x128xf32>
      %59 = arith.addf %55, %58 : vector<8x128xf32>
      %60 = arith.truncf %52 : vector<8x128xf32> to vector<8x128xbf16>
      %c0_41 = arith.constant 0 : index
      %c0_42 = arith.constant 0 : index
      %61 = vector.load %arg6[%c0_41, %c0_42] : memref<8x128xbf16, #tpu.memory_space<vmem>>, vector<8x128xbf16>
      tpu.vector_store %arg6[%c0_41, %c0_42], %60 {strides = array<i32>} : memref<8x128xbf16, #tpu.memory_space<vmem>>, vector<8x128xbf16>,
      %62 = arith.truncf %59 : vector<8x128xf32> to vector<8x128xbf16>
      %c0_43 = arith.constant 0 : index
      %c0_44 = arith.constant 0 : index
      %63 = vector.load %arg7[%c0_43, %c0_44] : memref<8x128xbf16, #tpu.memory_space<vmem>>, vector<8x128xbf16>
      tpu.vector_store %arg7[%c0_43, %c0_44], %62 {strides = array<i32>} : memref<8x128xbf16, #tpu.memory_space<vmem>>, vector<8x128xbf16>,
    } else {
    }
    %c8_i32 = arith.constant 8 : i32
    %3 = arith.muli %arg1, %c8_i32 : i32
    %4 = tpu.assume_multiple %3, 8 : i32
    %c0 = arith.constant 0 : index
    %5 = arith.index_cast %4 : i32 to index
    %c0_1 = arith.constant 0 : index
    %6 = vector.load %arg2[%c0, %5, %c0_1] : memref<1x8x128xbf16, #tpu.memory_space<vmem>>, vector<1x8x128xbf16>
    %7 = vector.shape_cast %6 : vector<1x8x128xbf16> to vector<8x128xbf16>
    %c0_2 = arith.constant 0 : index
    %c0_3 = arith.constant 0 : index
    %c0_4 = arith.constant 0 : index
    %8 = vector.load %arg3[%c0_2, %c0_3, %c0_4] : memref<4x128x128xbf16, #tpu.memory_space<vmem>>, vector<1x128x128xbf16>
    %9 = vector.shape_cast %8 : vector<1x128x128xbf16> to vector<128x128xbf16>
    %cst = arith.constant dense<0.000000e+00> : vector<8x128xf32>
    %10 = tpu.matmul %7, %9, %cst {dimension_numbers = #tpu.dot_dimension_numbers<[1], [0], [0], [1], [0, 0, 1, 1], [], []>} : vector<8x128xbf16>, vector<128x128xbf16>, vector<8x128xf32> -> vector<8x128xf32>
    %c0_5 = arith.constant 0 : index
    %c0_6 = arith.constant 0 : index
    %c0_7 = arith.constant 0 : index
    %11 = vector.load %arg4[%c0_5, %c0_6, %c0_7] : memref<4x1x128xf32, #tpu.memory_space<vmem>>, vector<1x1x128xf32>
    %12 = vector.shape_cast %11 : vector<1x1x128xf32> to vector<1x128xf32>
    %13 = vector.broadcast %12 : vector<1x128xf32> to vector<8x128xf32>
    %14 = arith.addf %10, %13 : vector<8x128xf32>
    %cst_8 = arith.constant 0.176776692 : f32
    %15 = vector.broadcast %cst_8 : f32 to vector<8x128xf32>
    %16 = arith.mulf %14, %15 : vector<8x128xf32>
    %17 = arith.truncf %16 : vector<8x128xf32> to vector<8x128xbf16>
    %c0_9 = arith.constant 0 : index
    %c0_10 = arith.constant 0 : index
    %18 = vector.load %arg6[%c0_9, %c0_10] : memref<8x128xbf16, #tpu.memory_space<vmem>>, vector<8x128xbf16>
    "tpu.trace_start"() <{level = 10 : i32, message = "qd,kd->qk"}> : () -> ()
    %cst_11 = arith.constant dense<0.000000e+00> : vector<8x8xf32>
    %19 = tpu.matmul %17, %18, %cst_11 {dimension_numbers = #tpu.dot_dimension_numbers<[1], [1], [0], [0], [0, 0, 1, 0], [], []>} : vector<8x128xbf16>, vector<8x128xbf16>, vector<8x8xf32> -> vector<8x8xf32>
    "tpu.trace_stop"() : () -> ()
    %cst_12 = arith.constant dense<0xFF800000> : vector<8xf32>
    %20 = vector.multi_reduction <maximumf>, %19, %cst_12 [1] : vector<8x8xf32> to vector<8xf32>
    %21 = vector.shape_cast %20 : vector<8xf32> to vector<8x1xf32>
    %22 = vector.broadcast %21 : vector<8x1xf32> to vector<8x8xf32>
    %23 = arith.subf %19, %22 : vector<8x8xf32>
    %24 = math.exp %23 : vector<8x8xf32>
    %cst_13 = arith.constant dense<0.000000e+00> : vector<8xf32>
    %25 = vector.multi_reduction <add>, %24, %cst_13 [1] : vector<8x8xf32> to vector<8xf32>
    %26 = vector.shape_cast %25 : vector<8xf32> to vector<8x1xf32>
    %27 = arith.truncf %24 : vector<8x8xf32> to vector<8x8xbf16>
    %c0_14 = arith.constant 0 : index
    %c0_15 = arith.constant 0 : index
    %28 = vector.load %arg7[%c0_14, %c0_15] : memref<8x128xbf16, #tpu.memory_space<vmem>>, vector<8x128xbf16>
    %cst_16 = arith.constant dense<0.000000e+00> : vector<8x128xf32>
    %29 = tpu.matmul %27, %28, %cst_16 {dimension_numbers = #tpu.dot_dimension_numbers<[1], [0], [0], [1], [0, 0, 1, 1], [], []>} : vector<8x8xbf16>, vector<8x128xbf16>, vector<8x128xf32> -> vector<8x128xf32>
    %30 = tpu.reciprocal %26 {approx = true} : vector<8x1xf32> -> vector<8x1xf32>
    %31 = vector.broadcast %30 : vector<8x1xf32> to vector<8x128xf32>
    %32 = arith.mulf %29, %31 : vector<8x128xf32>
    %33 = arith.truncf %32 : vector<8x128xf32> to vector<8x128xbf16>
    %c3 = arith.constant 3 : index
    %c0_17 = arith.constant 0 : index
    %c0_18 = arith.constant 0 : index
    %34 = vector.load %arg3[%c3, %c0_17, %c0_18] : memref<4x128x128xbf16, #tpu.memory_space<vmem>>, vector<1x128x128xbf16>
    %35 = vector.shape_cast %34 : vector<1x128x128xbf16> to vector<128x128xbf16>
    %cst_19 = arith.constant dense<0.000000e+00> : vector<8x128xf32>
    %36 = tpu.matmul %33, %35, %cst_19 {dimension_numbers = #tpu.dot_dimension_numbers<[1], [0], [0], [1], [0, 0, 1, 1], [], []>} : vector<8x128xbf16>, vector<128x128xbf16>, vector<8x128xf32> -> vector<8x128xf32>
    %c3_20 = arith.constant 3 : index
    %c0_21 = arith.constant 0 : index
    %c0_22 = arith.constant 0 : index
    %37 = vector.load %arg4[%c3_20, %c0_21, %c0_22] : memref<4x1x128xf32, #tpu.memory_space<vmem>>, vector<1x1x128xf32>
    %38 = vector.shape_cast %37 : vector<1x1x128xf32> to vector<1x128xf32>
    %39 = vector.broadcast %38 : vector<1x128xf32> to vector<8x128xf32>
    %40 = arith.addf %36, %39 : vector<8x128xf32>
    %c0_23 = arith.constant 0 : index
    %c0_24 = arith.constant 0 : index
    %c0_25 = arith.constant 0 : index
    %41 = vector.load %arg5[%c0_23, %c0_24, %c0_25] : memref<1x8x128xf32, #tpu.memory_space<vmem>>, vector<1x8x128xf32>
    %42 = vector.shape_cast %41 : vector<1x8x128xf32> to vector<8x128xf32>
    %43 = vector.shape_cast %40 : vector<8x128xf32> to vector<1x8x128xf32>
    tpu.vector_store %arg5[%c0_23, %c0_24, %c0_25], %43 {strides = array<i32>} : memref<1x8x128xf32, #tpu.memory_space<vmem>>, vector<1x8x128xf32>,
    return
  }
  func.func @transform_0(%arg0: i32, %arg1: i32) -> (i32, i32, i32) {
    %c0_i32 = arith.constant 0 : i32
    %c0_i32_0 = arith.constant 0 : i32
    %c0_i32_1 = arith.constant 0 : i32
    return %arg0, %c0_i32, %c0_i32_0 : i32, i32, i32
  }
  func.func @transform_1(%arg0: i32, %arg1: i32) -> (i32, i32, i32) {
    %c0_i32 = arith.constant 0 : i32
    %c0_i32_0 = arith.constant 0 : i32
    %c0_i32_1 = arith.constant 0 : i32
    %c0_i32_2 = arith.constant 0 : i32
    return %c0_i32, %c0_i32_0, %c0_i32_1 : i32, i32, i32
  }
  func.func @transform_2(%arg0: i32, %arg1: i32) -> (i32, i32, i32) {
    %c0_i32 = arith.constant 0 : i32
    %c0_i32_0 = arith.constant 0 : i32
    %c0_i32_1 = arith.constant 0 : i32
    %c0_i32_2 = arith.constant 0 : i32
    return %c0_i32, %c0_i32_0, %c0_i32_1 : i32, i32, i32
  }
  func.func @transform_3(%arg0: i32, %arg1: i32) -> (i32, i32, i32) {
    %c0_i32 = arith.constant 0 : i32
    %c0_i32_0 = arith.constant 0 : i32
    return %arg0, %arg1, %c0_i32 : i32, i32, i32
  }
}

</mosaic_0001>

<bundles_post_ra>
// kernel: tpu_custom_call.1
= control target key start
LH: loop header
LB: loop body
LE: loop exit
PB: predicated region body
PF: predicated region fallthrough
CT: control target
= control target key end

     0   :  { %8 = vsyncpa [#allocation5], 0  ;;  %s1379_s0 = inlined_call_operand.hbm [shape: bf16[2,8,128], index: 0, kind: input, shape index: {}]   ;;  %s1380_s1 = inlined_call_operand.hbm [shape: bf16[4,128,128], index: 1, kind: input, shape index: {}]   ;;  %s1381_s2 = inlined_call_operand.hbm [shape: f32[4,1,128], index: 2, kind: input, shape index: {}]   ;;  %s1382_s3 = inlined_call_operand.hbm [shape: f32[2,8,128], index: 3, kind: output, shape index: {}]  }
   0x1   :  { %10 = vsyncpa [#allocation5 + $0x1], 0 }
   0x2   :  { %11 = vsyncpa [#allocation8], 0 }
   0x3   :  { %12 = vsyncpa [#allocation6], 0 }
   0x4   :  { %14 = vsyncpa [#allocation6 + $0x1], 0  ;;  %s1227_s12 = smov 0   ;;  %s1229_s13 = smov 0  }
   0x5   :  { %s1231_s14 = smov 0   ;;  %s1233_s15 = smov 0  }
   0x6   :  { %s1235_s16 = smov 0   ;;  %s1237_s17 = smov 0  }
   0x7 LB: > { %s750_s18 = sadd.s32 4294967295, %s1199_s17   ;;  %p752_p0 = scmp.ge.s32.totalorder %s1199_s17, 1  ;;  %s1199_s17 = sphi %s1237_s17, %s20_s17   ;;  %s1195_s16 = sphi %s1235_s16, %s1392_s16   ;;  %s1191_s15 = sphi %s1233_s15, %s1391_s15   ;;  %s1187_s14 = sphi %s1231_s14, %s1390_s14   ;;  %s1183_s13 = sphi %s1229_s13, %s1389_s13   ;;  %s1179_s12 = sphi %s1227_s12, %s1388_s12  }
   0x8   : > { %p1261_p1 = scmp.eq.s32.totalorder %s750_s18, 0  ;;  %p133_p2 = scmp.lt.s32.totalorder %s1199_s17, 3 }
   0x9   : > { %s144_s22 = sshll.u32 %s1380_s1, 4  ;;  %s1201_s24 = smov [#allocation7]   ;;  %s145_s22 = int_to_ptr.hbm [resolvable:$true] %s144_s22 }
   0xa   : > { %p1269_p3 = pnand %p752_p0, %p133_p2  ;;  %s146_s25 = sshll.u32 %s1201_s24, 4  ;;  %s147_s25 = int_to_ptr.vmem [resolvable:$true] %s146_s25 }
   0xb   : > { %p755_p6 = scmp.ge.s32.totalorder %s1199_s17, 2  ;;  %s158_s28 = sshll.u32 %s1381_s2, 4  ;;  %s159_s28 = int_to_ptr.hbm [resolvable:$true] %s158_s28 }
   0xc   : > { %p940_p4 = pneg %p1269_p3  ;;  %s1202_s29 = smov 64  }
   0xd   : > { %s1203_s30 = smov 4   ;;  %s1204_s4 = smov [#allocation9]  }
   0xe   : > { %p941_p5 = pnand %p940_p4, %p1261_p1  ;;  %s160_s5 = sshll.u32 %s1204_s4, 4  ;;  %s161_s5 = int_to_ptr.vmem [resolvable:$true] %s160_s5 }
   0xf   : > { %s1205_s6 = smov 16   ;;  %s1206_s7 = smov 1  }
  0x10   : > { %943 = dma.hbm_to_vmem [thread:$0]  (!%p941_p5), %s145_s22, 4096, %s147_s25, [#allocation8], %s1202_s29, %s1202_s29, %s1203_s30  }
  0x11   : > { %946 = dma.hbm_to_vmem [thread:$0]  (!%p941_p5), %s159_s28, 64, %s161_s5, [#allocation8], %s1205_s6, %s1205_s6, %s1206_s7  }
  0x12   : > { %s32_s8 = sadd.s32 1, %s1195_s16  ;;  %s751_s9 = sadd.s32 4294967294, %s1199_s17  }
  0x13   : > { %p34_p7 = scmp.ge.s32.totalorder %s32_s8, 2  ;;  %s39_s10 = sadd.s32 1, %s1187_s14 }
  0x14   : > { %p46_p8 = scmp.ne.s32.totalorder %s1187_s14, %s1183_s13  ;;  %p47_p9 = scmp.eq.s32.totalorder %s1199_s17, 0 }
  0x15   : > { %s1394_s8 = smov (%p34_p7, %s32_s8), 0  ;;  %p52_p10 = scmp.ne.s32.totalorder %s1183_s13, %s1179_s12 }
  0x16   : > { %s36_s11 = ssub.s32 %s1195_s16, %s1394_s8  ;;  %p120_p11 = scmp.eq.s32.totalorder %s750_s18, 1 }
  0x17   : > { %p37_p12 = scmp.eq.s32.totalorder %s36_s11, 0  ;;  %p1297_p13 = por %p1261_p1, %p52_p10 }
  0x18   : > { %p1301_p0 = por %p120_p11, %p46_p8  ;;  %p126_p2 = scmp.eq.s32.totalorder %s751_s9, 1 }
  0x19   : > { %s1306_s22 = scalar_select %p37_p12, %s1187_s14, %s39_s10  }
  0x1a   : > { %p48_p4 = por %p47_p9, %p46_p8  ;;  %p1308_p5 = por %p126_p2, %p52_p10 }
  0x1b   : > { %s174_s25 = sand.u32 1, %s1187_s14   ;;  %s757_s18 = sshll.u32 %s1195_s16, 2 }
  0x1c   : > { %p957_p7 = scmp.lt.s32.totalorder %s1199_s17, 2  ;;  %s756_s26 = sshll.u32 %s174_s25, 2 }
  0x1d   : > { %s182_s29 = scalar_lea.hbm %s1379_s0, %s757_s18  ;;  %s178_s4 = scalar_lea.vmem [#allocation4], %s756_s26 }
  0x1e   : > { %s184_s30 = sshll.u32 %s182_s29, 4  ;;  %s186_s5 = sshll.u32 %s178_s4, 4  ;;  %s185_s30 = int_to_ptr.hbm [resolvable:$true] %s184_s30  ;;  %s187_s5 = int_to_ptr.vmem [resolvable:$true] %s186_s5 }
  0x1f   : > { %p948_p11 = pnand %p957_p7, %p48_p4  ;;  %s175_s6 = scalar_lea.sflag [#allocation5], %s174_s25 }
  0x20   : > { %195 = sbr.rel (%p1269_p3) target bundleno = 749 (0x2ed), region = 32  ;;  %s1321_s7 = sand.u32 (!%p1269_p3), 1, %s1183_s13  }
  0x21   : > { %950 = dma.hbm_to_vmem [thread:$0]  (!%p948_p11), %s185_s30, 64, %s187_s5, %s175_s6  }
  0x22   : > { %s759_s9 = sshll.u32 (!%p1269_p3), %s1321_s7, 2  ;;  %s198_s10 = scalar_lea.sflag (!%p1269_p3), [#allocation5], %s1321_s7 }
  0x23   : > { %s1325_s11 = scalar_lea.vmem (!%p1269_p3), [#allocation4], %s759_s9 }
  0x25   : > { %1166 = dma.done.wait (%p1297_p13), %s198_s10, 64  }
  0x26   : > { %1168 = vsyncadd (%p1297_p13), %s198_s10, 4294967232 }
  0x27   : > { %1170 = dma.done.wait (%p1261_p1), [#allocation8], 4160  }
  0x28   : > { %1172 = vsyncadd (%p1261_p1), [#allocation8], 4294963136  ;;  %v903_v0 = vld [vmem:[#allocation7 + $0x78] sm:$0xff]  ;;  %v902_v2 = vld [vmem:[#allocation7 + $0x70] sm:$0xff]  ;;  %vm514_vm0 = vcmask 64512   ;;  %vm529_vm1 = vcmask 1043456  }
  0x29   : > { %v919_v1 = vld [vmem:[#allocation7 + $0x38] sm:$0xff]  ;;  %311 = vmatpush.bf16.msra.mxu0 %v903_v0  ;;  %v918_v3 = vld [vmem:[#allocation7 + $0x30] sm:$0xff]  ;;  %v901_v4 = vld [vmem:[#allocation7 + $0x68] sm:$0xff]  ;;  %s893_s19 = sshll.u32 %s1191_s15, 3  ;;  %s762_s23 = sshll.u32 %s1321_s7, 3 }
  0x2a   : > { %485 = vmatpush.bf16.msra.mxu2 %v919_v1  ;;  %v917_v5 = vld [vmem:[#allocation7 + $0x28] sm:$0xff]  ;;  %v900_v6 = vld [vmem:[#allocation7 + $0x60] sm:$0xff]  ;;  %v899_v8 = vld [vmem:[#allocation7 + $0x58] sm:$0xff]  ;;  %s645_s18 = scalar_lea.hbm %s1382_s3, %s893_s19  ;;  %s234_s26 = scalar_lea.vmem [#allocation10], %s762_s23 }
  0x2b   : > { %v916_v7 = vld [vmem:[#allocation7 + $0x20] sm:$0xff]  ;;  %v915_v9 = vld [vmem:[#allocation7 + $0x18] sm:$0xff]  ;;  %v898_v10 = vld [vmem:[#allocation7 + $0x50] sm:$0xff]  ;;  %s647_s27 = sshll.u32 %s234_s26, 4  ;;  %s649_s28 = sshll.u32 %s645_s18, 4  ;;  %s648_s27 = int_to_ptr.vmem [resolvable:$true] %s647_s27  ;;  %s650_s28 = int_to_ptr.hbm [resolvable:$true] %s649_s28 }
  0x2c   : > { %v914_v11 = vld [vmem:[#allocation7 + $0x10] sm:$0xff]  ;;  %v897_v12 = vld [vmem:[#allocation7 + $0x48] sm:$0xff]  ;;  %v896_v14 = vld [vmem:[#allocation7 + $0x40] sm:$0xff]  ;;  %s634_s29 = scalar_lea.sflag [#allocation6], %s1321_s7  ;;  %s1127_s30 = sshra.s32 %s650_s28, 4  ;;  %s1128_s30 = int_to_ptr.hbm [resolvable:$true] %s1127_s30 }
  0x2d   : > { %312 = vmatpush.bf16.msra.mxu0 %v902_v2  ;;  %v913_v13 = vld [vmem:[#allocation7 + $0x8] sm:$0xff]  ;;  %v912_v15 = vld [vmem:[#allocation7] sm:$0xff]  ;;  %v240_v16 = vld [vmem:[%s1325_s11] sm:$0xf]  ;;  %s1129_s4 = scalar_lea.hbm %s1128_s30, 8  ;;  %s1133_s6 = scalar_lea.hbm %s1382_s3, 16 }
  0x2e   : > { %486 = vmatpush.bf16.msra.mxu2 %v918_v3  ;;  %v416_v17 = vld [vmem:[%s1325_s11] sm:$0xf]  ;;  %v910_v19 = vld [vmem:[#allocation7 + $0xb0] sm:$0xff]  ;;  %v909_v20 = vld [vmem:[#allocation7 + $0xa8] sm:$0xff]  ;;  %p1130_p1 = scmp.ne.s32.totalorder %s1128_s30, %s1129_s4  ;;  %p1134_p9 = scmp.lt.s32.totalorder %s1128_s30, %s1382_s3 }
  0x2f   : > { %v911_v18 = vld [vmem:[#allocation7 + $0xb8] sm:$0xff]  ;;  %v1015_v21 = vld [vmem:[#allocation9 + $0x1] ss:$0 sm:$0xff]  ;;  %v1016_v27 = vld [vmem:[#allocation9] ss:$0 sm:$0xff]  ;;  %p1135_p10 = scmp.lt.s32.totalorder %s1133_s6, %s1129_s4 }
  0x30   : > { %394 = vmatpush.bf16.msra.mxu1 %v911_v18  ;;  %v908_v22 = vld [vmem:[#allocation7 + $0xa0] sm:$0xff]  ;;  %v907_v25 = vld [vmem:[#allocation7 + $0x98] sm:$0xff]  ;;  %v906_v29 = vld [vmem:[#allocation7 + $0x90] sm:$0xff]  ;;  %p1131_p3 = pnand %p1130_p1, %p1301_p0 }
  0x31   : > { %313 = vmatpush.bf16.msra.mxu0 %v901_v4  ;;  %v905_v32 = vld [vmem:[#allocation7 + $0x88] sm:$0xff]  ;;  %v904_v36 = vld [vmem:[#allocation7 + $0x80] sm:$0xff]  ;;  %v927_v48 = vld [vmem:[#allocation7 + $0xf8] sm:$0xff]  ;;  %p1136_p12 = por %p1135_p10, %p1134_p9 }
  0x32   : > { %487 = vmatpush.bf16.msra.mxu2 %v917_v5  ;;  %v1017_v38 = vld [vmem:[#allocation9 + $0x2] ss:$0 sm:$0xff]  ;;  %v926_v49 = vld [vmem:[#allocation7 + $0xf0] sm:$0xff]  ;;  %v925_v50 = vld [vmem:[#allocation7 + $0xe8] sm:$0xff]  ;;  %p1132_p8 = pneg %p1131_p3 }
  0x33   : > { %v924_v57 = vld [vmem:[#allocation7 + $0xe0] sm:$0xff]  ;;  %v923_v58 = vld [vmem:[#allocation7 + $0xd8] sm:$0xff]  ;;  %v922_v59 = vld [vmem:[#allocation7 + $0xd0] sm:$0xff] }
  0x34   : > { %395 = vmatpush.bf16.msra.mxu1 %v910_v19  ;;  %v921_v60 = vld [vmem:[#allocation7 + $0xc8] sm:$0xff]  ;;  %v920_v61 = vld [vmem:[#allocation7 + $0xc0] sm:$0xff]  ;;  %p1137_p13 = pnand %p1136_p12, %p1132_p8 }
  0x35   : > { %314 = vmatpush.bf16.msra.mxu0 %v900_v6  ;;  %v1018_v4 = vld [vmem:[#allocation9 + $0x3] ss:$0 sm:$0xff] }
  0x36   : > { %488 = vmatpush.bf16.msra.mxu2 %v916_v7 }
  0x38   : > { %396 = vmatpush.bf16.msra.mxu1 %v909_v20 }
  0x39   : > { %315 = vmatpush.bf16.msra.mxu0 %v899_v8 }
  0x3a   : > { %489 = vmatpush.bf16.msra.mxu2 %v915_v9 }
  0x3c   : > { %397 = vmatpush.bf16.msra.mxu1 %v908_v22 }
  0x3d   : > { %316 = vmatpush.bf16.msra.mxu0 %v898_v10 }
  0x3e   : > { %490 = vmatpush.bf16.msra.mxu2 %v914_v11 }
  0x40   : > { %398 = vmatpush.bf16.msra.mxu1 %v907_v25 }
  0x41   : > { %317 = vmatpush.bf16.msra.mxu0 %v897_v12 }
  0x42   : > { %491 = vmatpush.bf16.msra.mxu2 %v913_v13 }
  0x44   : > { %399 = vmatpush.bf16.msra.mxu1 %v906_v29 }
  0x45   : > { %318 = vmatpush.bf16.msra.mxu0 %v896_v14 }
  0x46   : > { %492 = vmatpush.bf16.msra.mxu2 %v912_v15 }
  0x48   : > { %319 = vmatmul.bf16.vlgmr.msra.gmra.mxu0 %v240_v16  ;;  %400 = vmatpush.bf16.msra.mxu1 %v905_v32 }
  0x49   : > { %493 = vmatmul.bf16.vlgmr.msra.gmra.mxu2 %v416_v17 }
  0x4c   : > { %401 = vmatpush.bf16.msra.mxu1 %v904_v36 }
  0x4f   : > { %402 = vmatmul.bf16.vlgmr.msra.gmra.mxu1 %v240_v16 }
  0xc5   : > { %v320_v23 = vpop.f32.mrf.mxu0 }
  0xc6   : > { %v321_v24 = vadd.f32 %v1015_v21, %v320_v23 }
  0xc8   : > { %v407_v26 = vpack.c.bf16 %v321_v24, %v321_v24 }
  0xca   : > { %408 = vst [vmem:[#allocation2] sm:$0xf] %v407_v26 }
  0xcc   : > { %v494_v28 = vpop.f32.mrf.mxu2  ;;  %v403_v41 = vpop.f32.mrf.mxu1 }
  0xcd   : > { %v322_v30 = vpop.f32.mrf.mxu0  ;;  %v495_v31 = vadd.f32 %v1016_v27, %v494_v28  ;;  %v404_v42 = vadd.f32 %v1017_v38, %v403_v41 }
  0xcf   : > { %v498_v33 = vmul.f32 0.17677669, %v495_v31  ;;  %v409_v43 = vpack.c.bf16 %v404_v42, %v404_v42 }
  0xd1   : > { %v500_v34 = vld [vmem:[#allocation2] sm:$0xf]  ;;  %v499_v37 = vpack.c.bf16 %v498_v33, %v498_v33  ;;  %410 = vst [vmem:[#allocation3] sm:$0xf] %v409_v43 }
  0xd2   : > { %508 = vmatpush.bf16.xpose.msrb.mxu0 %v500_v34 }
  0xd4   : > { %v496_v35 = vpop.f32.mrf.mxu2  ;;  %v405_v45 = vpop.f32.mrf.mxu1 }
  0xd8   : > { %v525_v46 = vld [vmem:[#allocation3] sm:$0xf] }
  0xd9   : > { %509 = vmatmul.bf16.vlgmr.msrb.gmra.mxu0 %v499_v37  ;;  %v531_v47 = vsel %vm529_vm1, %v525_v46, 0 }
  0xda   : > { %540 = vmatpush.bf16.msra.mxu3 %v531_v47 }
  0xde   : > { %619 = vmatpush.bf16.msrb.mxu3 %v927_v48 }
  0xe2   : > { %620 = vmatpush.bf16.msrb.mxu3 %v926_v49 }
  0xe6   : > { %621 = vmatpush.bf16.msrb.mxu3 %v925_v50 }
  0xea   : > { %622 = vmatpush.bf16.msrb.mxu3 %v924_v57 }
  0xee   : > { %623 = vmatpush.bf16.msrb.mxu3 %v923_v58 }
  0xf2   : > { %624 = vmatpush.bf16.msrb.mxu3 %v922_v59 }
  0xf6   : > { %625 = vmatpush.bf16.msrb.mxu3 %v921_v60 }
  0xfa   : > { %626 = vmatpush.bf16.msrb.mxu3 %v920_v61 }
 0x156   : > { %v510_v39 = vpop.f32.mrf.mxu0 }
 0x157   : > { %v515_v40 = vsel %vm514_vm0, %v510_v39, -inf }
 0x158   : > { %516 = vmax.xlane.f32.xlu0 %v515_v40 }
 0x15e   : > { %v512_v44 = vpop.f32.mrf.mxu0 }
 0x1cb   : > { %v517_v51 = vpop.xlane.xlu0 %516 }
 0x1cc   : > { %v518_v52 = vsub.f32 %v510_v39, %v517_v51 }
 0x1ce   : > { %v519_v53 = vmul.f32 1.442695, %v518_v52 }
 0x1d0   : > { %1019 = vpow2.f32 %v519_v53 }
 0x1d6   : > { %v1020_v54 = vpop.eup %1019 }
 0x1d7   : > { %v521_v55 = vsel %vm514_vm0, %v1020_v54, 0.0  ;;  %v524_v56 = vpack.c.bf16 %v1020_v54, %v1020_v54 }
 0x1d8   : > { %522 = vadd.xlane.f32.xlu0 %v521_v55 }
 0x1d9   : > { %859 = vmatmul.msk.bf16.vlgmr.msra.gmra.mxu3 %vm514_vm0, %v524_v56 }
 0x24b   : > { %v523_v62 = vpop.xlane.xlu0 %522 }
 0x24c   : > { %1021 = vrcp.f32 %v523_v62 }
 0x252   : > { %v1022_v63 = vpop.eup %1021 }
 0x25c   : > { %v542_v0 = vpop.f32.mrf.mxu3 }
 0x25d   : > { %v547_v1 = vmul.f32 %v1022_v63, %v542_v0 }
 0x25f   : > { %v548_v2 = vpack.c.bf16 %v547_v1, %v547_v1 }
 0x261   : > { %627 = vmatmul.bf16.vlgmr.msrb.gmra.mxu3 %v548_v2 }
 0x264   : > { %v544_v3 = vpop.f32.mrf.mxu3 }
 0x2e4   : > { %v628_v5 = vpop.f32.mrf.mxu3 }
 0x2e5   : > { %v629_v6 = vadd.f32 %v1018_v4, %v628_v5 }
 0x2e7   : > { %632 = vst [vmem:[%s234_s26] sm:$0xff] %v629_v6 }
 0x2e8   : > { %1140 = shalt.err (!%p1137_p13)
}
 0x2e9   : > { %938 = dma.vmem_to_hbm [thread:$0]  (%p1301_p0), %s648_s27, 128, %s650_s28, %s634_s29  }
 0x2ec   : > { %v630_v7 = vpop.f32.mrf.mxu3 }
 0x2ed PF: > { %s661_s7 = sand.u32 1, %s1179_s12   ;;  %p952_p2 = pnand %p755_p6, %p1308_p5 }
 0x2ee   : > { %s662_s11 = scalar_lea.sflag [#allocation6], %s661_s7 }
 0x2ef   : > { %p953_p4 = pneg %p952_p2 }
 0x2f1   : > { %1174 = dma.done.wait (%p953_p4), %s662_s11, 128  }
 0x2f2   : > { %1176 = vsyncadd (%p953_p4), %s662_s11, 4294967168  ;;  %s20_s17 = sadd.s32 1, %s1199_s17   ;;  %s1388_s12 = smov %s1183_s13 }
 0x2f3   : > { %p17_p7 = scmp.ge.s32.totalorder %s20_s17, 4   ;;  %s1389_s13 = smov %s1187_s14 }
 0x2f4   : > { %s1390_s14 = smov %s1306_s22  ;;  %s1391_s15 = smov %s1195_s16 }
 0x2f5   : > { %s1392_s16 = smov %s1394_s8  ;;  %19 = sbr.rel (!%p17_p7) target bundleno = 7 (0x7), region = 96 }
 0x2fa   :  { %668 = vsyncpa [#allocation5], 1 }
 0x2fb   :  { %670 = vsyncpa [#allocation5 + $0x1], 1 }
 0x2fc   :  { %671 = vsyncpa [#allocation8], 1 }
 0x2fd   :  { %672 = vsyncpa [#allocation6], 1 }
 0x2fe   :  { %674 = vsyncpa [#allocation6 + $0x1], 1 }

// kernel: tpu_custom_call.1
= control target key start
LH: loop header
LB: loop body
LE: loop exit
PB: predicated region body
PF: predicated region fallthrough
CT: control target
= control target key end

     0   :  { %8 = vsyncpa [#allocation5], 0  ;;  %s1379_s0 = inlined_call_operand.hbm [shape: bf16[2,8,128], index: 0, kind: input, shape index: {}]   ;;  %s1380_s1 = inlined_call_operand.hbm [shape: bf16[4,128,128], index: 1, kind: input, shape index: {}]   ;;  %s1381_s2 = inlined_call_operand.hbm [shape: f32[4,1,128], index: 2, kind: input, shape index: {}]   ;;  %s1382_s3 = inlined_call_operand.hbm [shape: f32[2,8,128], index: 3, kind: output, shape index: {}]  }
   0x1   :  { %10 = vsyncpa [#allocation5 + $0x1], 0 }
   0x2   :  { %11 = vsyncpa [#allocation8], 0 }
   0x3   :  { %12 = vsyncpa [#allocation6], 0 }
   0x4   :  { %14 = vsyncpa [#allocation6 + $0x1], 0  ;;  %s1227_s12 = smov 0   ;;  %s1229_s13 = smov 0  }
   0x5   :  { %s1231_s14 = smov 0   ;;  %s1233_s15 = smov 0  }
   0x6   :  { %s1235_s16 = smov 0   ;;  %s1237_s17 = smov 0  }
   0x7 LB: > { %s750_s18 = sadd.s32 4294967295, %s1199_s17   ;;  %p752_p0 = scmp.ge.s32.totalorder %s1199_s17, 1  ;;  %s1199_s17 = sphi %s1237_s17, %s20_s17   ;;  %s1195_s16 = sphi %s1235_s16, %s1392_s16   ;;  %s1191_s15 = sphi %s1233_s15, %s1391_s15   ;;  %s1187_s14 = sphi %s1231_s14, %s1390_s14   ;;  %s1183_s13 = sphi %s1229_s13, %s1389_s13   ;;  %s1179_s12 = sphi %s1227_s12, %s1388_s12  }
   0x8   : > { %p1261_p1 = scmp.eq.s32.totalorder %s750_s18, 0  ;;  %p133_p2 = scmp.lt.s32.totalorder %s1199_s17, 3 }
   0x9   : > { %s144_s22 = sshll.u32 %s1380_s1, 4  ;;  %s1201_s24 = smov [#allocation7]   ;;  %s145_s22 = int_to_ptr.hbm [resolvable:$true] %s144_s22 }
   0xa   : > { %p1269_p3 = pnand %p752_p0, %p133_p2  ;;  %s146_s25 = sshll.u32 %s1201_s24, 4  ;;  %s147_s25 = int_to_ptr.vmem [resolvable:$true] %s146_s25 }
   0xb   : > { %p755_p6 = scmp.ge.s32.totalorder %s1199_s17, 2  ;;  %s158_s28 = sshll.u32 %s1381_s2, 4  ;;  %s159_s28 = int_to_ptr.hbm [resolvable:$true] %s158_s28 }
   0xc   : > { %p940_p4 = pneg %p1269_p3  ;;  %s1202_s29 = smov 64  }
   0xd   : > { %s1203_s30 = smov 4   ;;  %s1204_s4 = smov [#allocation9]  }
   0xe   : > { %p941_p5 = pnand %p940_p4, %p1261_p1  ;;  %s160_s5 = sshll.u32 %s1204_s4, 4  ;;  %s161_s5 = int_to_ptr.vmem [resolvable:$true] %s160_s5 }
   0xf   : > { %s1205_s6 = smov 16   ;;  %s1206_s7 = smov 1  }
  0x10   : > { %943 = dma.hbm_to_vmem [thread:$0]  (!%p941_p5), %s145_s22, 4096, %s147_s25, [#allocation8], %s1202_s29, %s1202_s29, %s1203_s30  }
  0x11   : > { %946 = dma.hbm_to_vmem [thread:$0]  (!%p941_p5), %s159_s28, 64, %s161_s5, [#allocation8], %s1205_s6, %s1205_s6, %s1206_s7  }
  0x12   : > { %s32_s8 = sadd.s32 1, %s1195_s16  ;;  %s751_s9 = sadd.s32 4294967294, %s1199_s17  }
  0x13   : > { %p34_p7 = scmp.ge.s32.totalorder %s32_s8, 2  ;;  %s39_s10 = sadd.s32 1, %s1187_s14 }
  0x14   : > { %p46_p8 = scmp.ne.s32.totalorder %s1187_s14, %s1183_s13  ;;  %p47_p9 = scmp.eq.s32.totalorder %s1199_s17, 0 }
  0x15   : > { %s1394_s8 = smov (%p34_p7, %s32_s8), 0  ;;  %p52_p10 = scmp.ne.s32.totalorder %s1183_s13, %s1179_s12 }
  0x16   : > { %s36_s11 = ssub.s32 %s1195_s16, %s1394_s8  ;;  %p120_p11 = scmp.eq.s32.totalorder %s750_s18, 1 }
  0x17   : > { %p37_p12 = scmp.eq.s32.totalorder %s36_s11, 0  ;;  %p1297_p13 = por %p1261_p1, %p52_p10 }
  0x18   : > { %p1301_p0 = por %p120_p11, %p46_p8  ;;  %p126_p2 = scmp.eq.s32.totalorder %s751_s9, 1 }
  0x19   : > { %s1306_s22 = scalar_select %p37_p12, %s1187_s14, %s39_s10  }
  0x1a   : > { %p48_p4 = por %p47_p9, %p46_p8  ;;  %p1308_p5 = por %p126_p2, %p52_p10 }
  0x1b   : > { %s174_s25 = sand.u32 1, %s1187_s14   ;;  %s757_s18 = sshll.u32 %s1195_s16, 2 }
  0x1c   : > { %p957_p7 = scmp.lt.s32.totalorder %s1199_s17, 2  ;;  %s756_s26 = sshll.u32 %s174_s25, 2 }
  0x1d   : > { %s182_s29 = scalar_lea.hbm %s1379_s0, %s757_s18  ;;  %s178_s4 = scalar_lea.vmem [#allocation4], %s756_s26 }
  0x1e   : > { %s184_s30 = sshll.u32 %s182_s29, 4  ;;  %s186_s5 = sshll.u32 %s178_s4, 4  ;;  %s185_s30 = int_to_ptr.hbm [resolvable:$true] %s184_s30  ;;  %s187_s5 = int_to_ptr.vmem [resolvable:$true] %s186_s5 }
  0x1f   : > { %p948_p11 = pnand %p957_p7, %p48_p4  ;;  %s175_s6 = scalar_lea.sflag [#allocation5], %s174_s25 }
  0x20   : > { %195 = sbr.rel (%p1269_p3) target bundleno = 749 (0x2ed), region = 32  ;;  %s1321_s7 = sand.u32 (!%p1269_p3), 1, %s1183_s13  }
  0x21   : > { %950 = dma.hbm_to_vmem [thread:$0]  (!%p948_p11), %s185_s30, 64, %s187_s5, %s175_s6  }
  0x22   : > { %s759_s9 = sshll.u32 (!%p1269_p3), %s1321_s7, 2  ;;  %s198_s10 = scalar_lea.sflag (!%p1269_p3), [#allocation5], %s1321_s7 }
  0x23   : > { %s1325_s11 = scalar_lea.vmem (!%p1269_p3), [#allocation4], %s759_s9 }
  0x25   : > { %1166 = dma.done.wait (%p1297_p13), %s198_s10, 64  }
  0x26   : > { %1168 = vsyncadd (%p1297_p13), %s198_s10, 4294967232 }
  0x27   : > { %1170 = dma.done.wait (%p1261_p1), [#allocation8], 4160  }
  0x28   : > { %1172 = vsyncadd (%p1261_p1), [#allocation8], 4294963136  ;;  %v903_v0 = vld [vmem:[#allocation7 + $0x78] sm:$0xff]  ;;  %v902_v2 = vld [vmem:[#allocation7 + $0x70] sm:$0xff]  ;;  %vm514_vm0 = vcmask 64512   ;;  %vm529_vm1 = vcmask 1043456  }
  0x29   : > { %v919_v1 = vld [vmem:[#allocation7 + $0x38] sm:$0xff]  ;;  %311 = vmatpush.bf16.msra.mxu0 %v903_v0  ;;  %v918_v3 = vld [vmem:[#allocation7 + $0x30] sm:$0xff]  ;;  %v901_v4 = vld [vmem:[#allocation7 + $0x68] sm:$0xff]  ;;  %s893_s19 = sshll.u32 %s1191_s15, 3  ;;  %s762_s23 = sshll.u32 %s1321_s7, 3 }
  0x2a   : > { %485 = vmatpush.bf16.msra.mxu2 %v919_v1  ;;  %v917_v5 = vld [vmem:[#allocation7 + $0x28] sm:$0xff]  ;;  %v900_v6 = vld [vmem:[#allocation7 + $0x60] sm:$0xff]  ;;  %v899_v8 = vld [vmem:[#allocation7 + $0x58] sm:$0xff]  ;;  %s645_s18 = scalar_lea.hbm %s1382_s3, %s893_s19  ;;  %s234_s26 = scalar_lea.vmem [#allocation10], %s762_s23 }
  0x2b   : > { %v916_v7 = vld [vmem:[#allocation7 + $0x20] sm:$0xff]  ;;  %v915_v9 = vld [vmem:[#allocation7 + $0x18] sm:$0xff]  ;;  %v898_v10 = vld [vmem:[#allocation7 + $0x50] sm:$0xff]  ;;  %s647_s27 = sshll.u32 %s234_s26, 4  ;;  %s649_s28 = sshll.u32 %s645_s18, 4  ;;  %s648_s27 = int_to_ptr.vmem [resolvable:$true] %s647_s27  ;;  %s650_s28 = int_to_ptr.hbm [resolvable:$true] %s649_s28 }
  0x2c   : > { %v914_v11 = vld [vmem:[#allocation7 + $0x10] sm:$0xff]  ;;  %v897_v12 = vld [vmem:[#allocation7 + $0x48] sm:$0xff]  ;;  %v896_v14 = vld [vmem:[#allocation7 + $0x40] sm:$0xff]  ;;  %s634_s29 = scalar_lea.sflag [#allocation6], %s1321_s7  ;;  %s1127_s30 = sshra.s32 %s650_s28, 4  ;;  %s1128_s30 = int_to_ptr.hbm [resolvable:$true] %s1127_s30 }
  0x2d   : > { %312 = vmatpush.bf16.msra.mxu0 %v902_v2  ;;  %v913_v13 = vld [vmem:[#allocation7 + $0x8] sm:$0xff]  ;;  %v912_v15 = vld [vmem:[#allocation7] sm:$0xff]  ;;  %v240_v16 = vld [vmem:[%s1325_s11] sm:$0xf]  ;;  %s1129_s4 = scalar_lea.hbm %s1128_s30, 8  ;;  %s1133_s6 = scalar_lea.hbm %s1382_s3, 16 }
  0x2e   : > { %486 = vmatpush.bf16.msra.mxu2 %v918_v3  ;;  %v416_v17 = vld [vmem:[%s1325_s11] sm:$0xf]  ;;  %v910_v19 = vld [vmem:[#allocation7 + $0xb0] sm:$0xff]  ;;  %v909_v20 = vld [vmem:[#allocation7 + $0xa8] sm:$0xff]  ;;  %p1130_p1 = scmp.ne.s32.totalorder %s1128_s30, %s1129_s4  ;;  %p1134_p9 = scmp.lt.s32.totalorder %s1128_s30, %s1382_s3 }
  0x2f   : > { %v911_v18 = vld [vmem:[#allocation7 + $0xb8] sm:$0xff]  ;;  %v1015_v21 = vld [vmem:[#allocation9 + $0x1] ss:$0 sm:$0xff]  ;;  %v1016_v27 = vld [vmem:[#allocation9] ss:$0 sm:$0xff]  ;;  %p1135_p10 = scmp.lt.s32.totalorder %s1133_s6, %s1129_s4 }
  0x30   : > { %394 = vmatpush.bf16.msra.mxu1 %v911_v18  ;;  %v908_v22 = vld [vmem:[#allocation7 + $0xa0] sm:$0xff]  ;;  %v907_v25 = vld [vmem:[#allocation7 + $0x98] sm:$0xff]  ;;  %v906_v29 = vld [vmem:[#allocation7 + $0x90] sm:$0xff]  ;;  %p1131_p3 = pnand %p1130_p1, %p1301_p0 }
  0x31   : > { %313 = vmatpush.bf16.msra.mxu0 %v901_v4  ;;  %v905_v32 = vld [vmem:[#allocation7 + $0x88] sm:$0xff]  ;;  %v904_v36 = vld [vmem:[#allocation7 + $0x80] sm:$0xff]  ;;  %v927_v48 = vld [vmem:[#allocation7 + $0xf8] sm:$0xff]  ;;  %p1136_p12 = por %p1135_p10, %p1134_p9 }
  0x32   : > { %487 = vmatpush.bf16.msra.mxu2 %v917_v5  ;;  %v1017_v38 = vld [vmem:[#allocation9 + $0x2] ss:$0 sm:$0xff]  ;;  %v926_v49 = vld [vmem:[#allocation7 + $0xf0] sm:$0xff]  ;;  %v925_v50 = vld [vmem:[#allocation7 + $0xe8] sm:$0xff]  ;;  %p1132_p8 = pneg %p1131_p3 }
  0x33   : > { %v924_v57 = vld [vmem:[#allocation7 + $0xe0] sm:$0xff]  ;;  %v923_v58 = vld [vmem:[#allocation7 + $0xd8] sm:$0xff]  ;;  %v922_v59 = vld [vmem:[#allocation7 + $0xd0] sm:$0xff] }
  0x34   : > { %395 = vmatpush.bf16.msra.mxu1 %v910_v19  ;;  %v921_v60 = vld [vmem:[#allocation7 + $0xc8] sm:$0xff]  ;;  %v920_v61 = vld [vmem:[#allocation7 + $0xc0] sm:$0xff]  ;;  %p1137_p13 = pnand %p1136_p12, %p1132_p8 }
  0x35   : > { %314 = vmatpush.bf16.msra.mxu0 %v900_v6  ;;  %v1018_v4 = vld [vmem:[#allocation9 + $0x3] ss:$0 sm:$0xff] }
  0x36   : > { %488 = vmatpush.bf16.msra.mxu2 %v916_v7 }
  0x38   : > { %396 = vmatpush.bf16.msra.mxu1 %v909_v20 }
  0x39   : > { %315 = vmatpush.bf16.msra.mxu0 %v899_v8 }
  0x3a   : > { %489 = vmatpush.bf16.msra.mxu2 %v915_v9 }
  0x3c   : > { %397 = vmatpush.bf16.msra.mxu1 %v908_v22 }
  0x3d   : > { %316 = vmatpush.bf16.msra.mxu0 %v898_v10 }
  0x3e   : > { %490 = vmatpush.bf16.msra.mxu2 %v914_v11 }
  0x40   : > { %398 = vmatpush.bf16.msra.mxu1 %v907_v25 }
  0x41   : > { %317 = vmatpush.bf16.msra.mxu0 %v897_v12 }
  0x42   : > { %491 = vmatpush.bf16.msra.mxu2 %v913_v13 }
  0x44   : > { %399 = vmatpush.bf16.msra.mxu1 %v906_v29 }
  0x45   : > { %318 = vmatpush.bf16.msra.mxu0 %v896_v14 }
  0x46   : > { %492 = vmatpush.bf16.msra.mxu2 %v912_v15 }
  0x48   : > { %319 = vmatmul.bf16.vlgmr.msra.gmra.mxu0 %v240_v16  ;;  %400 = vmatpush.bf16.msra.mxu1 %v905_v32 }
  0x49   : > { %493 = vmatmul.bf16.vlgmr.msra.gmra.mxu2 %v416_v17 }
  0x4c   : > { %401 = vmatpush.bf16.msra.mxu1 %v904_v36 }
  0x4f   : > { %402 = vmatmul.bf16.vlgmr.msra.gmra.mxu1 %v240_v16 }
  0xc5   : > { %v320_v23 = vpop.f32.mrf.mxu0 }
  0xc6   : > { %v321_v24 = vadd.f32 %v1015_v21, %v320_v23 }
  0xc8   : > { %v407_v26 = vpack.c.bf16 %v321_v24, %v321_v24 }
  0xca   : > { %408 = vst [vmem:[#allocation2] sm:$0xf] %v407_v26 }
  0xcc   : > { %v494_v28 = vpop.f32.mrf.mxu2  ;;  %v403_v41 = vpop.f32.mrf.mxu1 }
  0xcd   : > { %v322_v30 = vpop.f32.mrf.mxu0  ;;  %v495_v31 = vadd.f32 %v1016_v27, %v494_v28  ;;  %v404_v42 = vadd.f32 %v1017_v38, %v403_v41 }
  0xcf   : > { %v498_v33 = vmul.f32 0.17677669, %v495_v31  ;;  %v409_v43 = vpack.c.bf16 %v404_v42, %v404_v42 }
  0xd1   : > { %v500_v34 = vld [vmem:[#allocation2] sm:$0xf]  ;;  %v499_v37 = vpack.c.bf16 %v498_v33, %v498_v33  ;;  %410 = vst [vmem:[#allocation3] sm:$0xf] %v409_v43 }
  0xd2   : > { %508 = vmatpush.bf16.xpose.msrb.mxu0 %v500_v34 }
  0xd4   : > { %v496_v35 = vpop.f32.mrf.mxu2  ;;  %v405_v45 = vpop.f32.mrf.mxu1 }
  0xd8   : > { %v525_v46 = vld [vmem:[#allocation3] sm:$0xf] }
  0xd9   : > { %509 = vmatmul.bf16.vlgmr.msrb.gmra.mxu0 %v499_v37  ;;  %v531_v47 = vsel %vm529_vm1, %v525_v46, 0 }
  0xda   : > { %540 = vmatpush.bf16.msra.mxu3 %v531_v47 }
  0xde   : > { %619 = vmatpush.bf16.msrb.mxu3 %v927_v48 }
  0xe2   : > { %620 = vmatpush.bf16.msrb.mxu3 %v926_v49 }
  0xe6   : > { %621 = vmatpush.bf16.msrb.mxu3 %v925_v50 }
  0xea   : > { %622 = vmatpush.bf16.msrb.mxu3 %v924_v57 }
  0xee   : > { %623 = vmatpush.bf16.msrb.mxu3 %v923_v58 }
  0xf2   : > { %624 = vmatpush.bf16.msrb.mxu3 %v922_v59 }
  0xf6   : > { %625 = vmatpush.bf16.msrb.mxu3 %v921_v60 }
  0xfa   : > { %626 = vmatpush.bf16.msrb.mxu3 %v920_v61 }
 0x156   : > { %v510_v39 = vpop.f32.mrf.mxu0 }
 0x157   : > { %v515_v40 = vsel %vm514_vm0, %v510_v39, -inf }
 0x158   : > { %516 = vmax.xlane.f32.xlu0 %v515_v40 }
 0x15e   : > { %v512_v44 = vpop.f32.mrf.mxu0 }
 0x1cb   : > { %v517_v51 = vpop.xlane.xlu0 %516 }
 0x1cc   : > { %v518_v52 = vsub.f32 %v510_v39, %v517_v51 }
 0x1ce   : > { %v519_v53 = vmul.f32 1.442695, %v518_v52 }
 0x1d0   : > { %1019 = vpow2.f32 %v519_v53 }
 0x1d6   : > { %v1020_v54 = vpop.eup %1019 }
 0x1d7   : > { %v521_v55 = vsel %vm514_vm0, %v1020_v54, 0.0  ;;  %v524_v56 = vpack.c.bf16 %v1020_v54, %v1020_v54 }
 0x1d8   : > { %522 = vadd.xlane.f32.xlu0 %v521_v55 }
 0x1d9   : > { %859 = vmatmul.msk.bf16.vlgmr.msra.gmra.mxu3 %vm514_vm0, %v524_v56 }
 0x24b   : > { %v523_v62 = vpop.xlane.xlu0 %522 }
 0x24c   : > { %1021 = vrcp.f32 %v523_v62 }
 0x252   : > { %v1022_v63 = vpop.eup %1021 }
 0x25c   : > { %v542_v0 = vpop.f32.mrf.mxu3 }
 0x25d   : > { %v547_v1 = vmul.f32 %v1022_v63, %v542_v0 }
 0x25f   : > { %v548_v2 = vpack.c.bf16 %v547_v1, %v547_v1 }
 0x261   : > { %627 = vmatmul.bf16.vlgmr.msrb.gmra.mxu3 %v548_v2 }
 0x264   : > { %v544_v3 = vpop.f32.mrf.mxu3 }
 0x2e4   : > { %v628_v5 = vpop.f32.mrf.mxu3 }
 0x2e5   : > { %v629_v6 = vadd.f32 %v1018_v4, %v628_v5 }
 0x2e7   : > { %632 = vst [vmem:[%s234_s26] sm:$0xff] %v629_v6 }
 0x2e8   : > { %1140 = shalt.err (!%p1137_p13)
}
 0x2e9   : > { %938 = dma.vmem_to_hbm [thread:$0]  (%p1301_p0), %s648_s27, 128, %s650_s28, %s634_s29  }
 0x2ec   : > { %v630_v7 = vpop.f32.mrf.mxu3 }
 0x2ed PF: > { %s661_s7 = sand.u32 1, %s1179_s12   ;;  %p952_p2 = pnand %p755_p6, %p1308_p5 }
 0x2ee   : > { %s662_s11 = scalar_lea.sflag [#allocation6], %s661_s7 }
 0x2ef   : > { %p953_p4 = pneg %p952_p2 }
 0x2f1   : > { %1174 = dma.done.wait (%p953_p4), %s662_s11, 128  }
 0x2f2   : > { %1176 = vsyncadd (%p953_p4), %s662_s11, 4294967168  ;;  %s20_s17 = sadd.s32 1, %s1199_s17   ;;  %s1388_s12 = smov %s1183_s13 }
 0x2f3   : > { %p17_p7 = scmp.ge.s32.totalorder %s20_s17, 4   ;;  %s1389_s13 = smov %s1187_s14 }
 0x2f4   : > { %s1390_s14 = smov %s1306_s22  ;;  %s1391_s15 = smov %s1195_s16 }
 0x2f5   : > { %s1392_s16 = smov %s1394_s8  ;;  %19 = sbr.rel (!%p17_p7) target bundleno = 7 (0x7), region = 96 }
 0x2fa   :  { %668 = vsyncpa [#allocation5], 1 }
 0x2fb   :  { %670 = vsyncpa [#allocation5 + $0x1], 1 }
 0x2fc   :  { %671 = vsyncpa [#allocation8], 1 }
 0x2fd   :  { %672 = vsyncpa [#allocation6], 1 }
 0x2fe   :  { %674 = vsyncpa [#allocation6 + $0x1], 1 }

</bundles_post_ra>
